<compile_context>
chip_gen: v7x
topology: tpu7x:2x2x1
jax: 0.10.0
libtpu: 0.0.40
codegen_flags: <defaults>
</compile_context>

<pallas_src>
import functools

import jax
import jax.numpy as jnp
from jax import lax
from jax.experimental import pallas as pl
from jax.experimental.pallas import tpu as pltpu


def _cdiv(a, b):
    return (a + b - 1) // b


def _rup(x, m):
    return ((x + m - 1) // m) * m


def _vmem_capacity_bytes():
    """Physical per-core VMEM; conservative fallback (v7x) if the query fails."""
    try:
        info = pltpu.get_tpu_info()
        cap = getattr(info, "vmem_capacity_bytes", None)
        if cap:
            return int(cap)
    except Exception:
        pass
    return 64 << 20


def _qrnn_kernel(T_S, Bt, K, Hp, unroll, *refs):
    """One (batch-tile, time-tile) grid step.

    refs (K > 1):
      x_ref : (T_S, Bt, I)        input tile (X_win rows [t*T_S,(t+1)*T_S))
      w_ref : (K, I, 2*Hp)        per-tap fused conv weights [Wz | Wf]
      b_ref : (1, 2*Hp)           fused bias (f32)
      h0_ref: (Bt, Hp)            initial hidden state for this batch tile
      c0_ref: (K-1, Bt, I)        initial halo (first K-1 rows of padded input)
      out_ref:(T_S, Bt, Hp)       output tile
      h_scr : (Bt, Hp) f32        hidden state carried across time tiles
      g_scr : (T_S*Bt, 2*Hp) f32  precomputed recurrence coeffs [a=f*z | b=1-f]
      w_scr : (T_S+K-1, Bt, I)    persistent conv window (halo + tile)
    refs (K == 1): same without c0_ref / w_scr.
    """
    if K > 1:
        (x_ref, w_ref, b_ref, h0_ref, c0_ref,
         out_ref, h_scr, g_scr, w_scr) = refs
    else:
        (x_ref, w_ref, b_ref, h0_ref,
         out_ref, h_scr, g_scr) = refs
        c0_ref = None
        w_scr = None

    t_idx = pl.program_id(1)

    # ---- per-batch-tile init (time tile 0) ----
    @pl.when(t_idx == 0)
    def _():
        h_scr[...] = h0_ref[...]
        if K > 1:
            w_scr[pl.ds(0, K - 1)] = c0_ref[...]

    # ---- write this tile's rows once into the persistent window scratch ----
    if K > 1:
        w_scr[pl.ds(K - 1, T_S)] = x_ref[...]

    def tap(k):
        if K > 1:
            rows = w_scr[pl.ds(k, T_S)]        # (T_S, Bt, I), static offset k
        else:
            rows = x_ref[...]
        # collapse leading dims (Bt is a sublane multiple -> layout-preserving)
        return rows.reshape(T_S * Bt, rows.shape[-1])

    # ---- conv = K accumulating MXU matmuls (no lane-axis concat) ----
    gates = jnp.dot(tap(0), w_ref[0], preferred_element_type=jnp.float32)
    for k in range(1, K):
        gates = gates + jnp.dot(tap(k), w_ref[k],
                                preferred_element_type=jnp.float32)
    gates = gates + b_ref[...]                 # bias added once

    # ---- carry the (K-1)-row halo for the next time tile ----
    if K > 1:
        w_scr[pl.ds(0, K - 1)] = w_scr[pl.ds(T_S, K - 1)]

    # ---- gate activations (vectorized); sigmoid via a single tanh EUP op ----
    z = gates[:, :Hp]
    f_pre = gates[:, Hp:]
    f = 0.5 * jnp.tanh(0.5 * f_pre) + 0.5                    # sigmoid(f_pre)
    z_act = z * (0.5 * jnp.tanh(0.851 * z) + 0.5)            # QuickGELU(z)
    # precompute a = f*z, b = 1-f so the serial chain is one FMA per step
    g_scr[:, :Hp] = f * z_act
    g_scr[:, Hp:] = 1.0 - f

    # ---- sequential forget-mult:  h_t = a_t + b_t * h_{t-1} ----
    def body(t, h):
        start = pl.multiple_of(t * Bt, Bt)                   # Bt multiple of 8
        g = g_scr[pl.ds(start, Bt), :]
        h_new = g[:, :Hp] + g[:, Hp:] * h
        out_ref[t] = h_new.astype(out_ref.dtype)             # full-lane store
        return h_new

    h_scr[...] = lax.fori_loop(0, T_S, body, h_scr[...], unroll=unroll)


def qrnn_layer(X, Wz, bz, Wf, bf, hidden=None,
               lookback_window=1, lookahead_window=0,
               tile_seq=None, batch_tile=None,
               compute_dtype=jnp.float32, out_dtype=None):
    """Pallas-TPU forward of QRNNLayer (output_gate=False).

    X: (seq_len, batch, input_size) float32
    Wz/Wf: (hidden, input, K) PyTorch Conv1d weights,  bz/bf: (hidden,)
    hidden: optional (batch, hidden) initial state.
    compute_dtype: matmul operand dtype (f32 or bf16; accumulation stays f32).
    Returns (H, h_n) with shapes (S, B, hidden) and (1, B, hidden).
    """
    S, B, I = X.shape
    H = Wz.shape[0]
    K = lookback_window + 1 + lookahead_window
    assert Wz.shape == (H, I, K) and Wf.shape == (H, I, K)

    out_dtype = jnp.float32 if out_dtype is None else out_dtype
    csize = jnp.dtype(compute_dtype).itemsize
    osize = jnp.dtype(out_dtype).itemsize

    Hp = _rup(H, 128)                          # lane-dense hidden
    lane_i = _rup(I, 128)

    # ---- batch tiling: fatten the recurrence, but keep >=2 tiles when possible
    if batch_tile is None:
        Bt = min(_rup(B, 8), 64)
    else:
        Bt = max(8, _rup(batch_tile, 8))
    Bp = _rup(max(B, Bt), Bt)
    NB = Bp // Bt
    if batch_tile is None and NB == 1 and Bp >= 16:
        # split so the "parallel" batch axis has >= 2 blocks (v7x: 2 TCs/chip)
        for cand in range((Bp // 2) // 8 * 8, 7, -8):
            if Bp % cand == 0:
                Bt = cand
                NB = Bp // Bt
                break

    # ---- VMEM footprint model (pipeline buffers + scratch + temporaries) ----
    vmem_phys = _vmem_capacity_bytes()
    budget = int(0.70 * vmem_phys)
    halo = max(K - 1, 0)

    def footprint(ts):
        fp = (2 * ts * Bt * lane_i * csize                       # X tile x2
              + 2 * ts * Bt * Hp * osize                         # out tile x2
              + ts * Bt * 2 * Hp * 4                             # g_scr
              + 2 * K * _rup(I, 8) * 2 * Hp * csize              # weights
              + 2 * 8 * 2 * Hp * 4                               # bias
              + 3 * Bt * Hp * 4                                  # h0 + h_scr
              # in-kernel temporaries: gates, activations, tap copies
              + 2 * ts * Bt * 2 * Hp * 4
              + 2 * ts * Bt * Hp * 4
              + K * ts * Bt * lane_i * csize)
        if K > 1:
            fp += (ts + halo) * Bt * lane_i * csize              # w_scr
            fp += 2 * _rup(halo, 8) * Bt * lane_i * csize        # C0 x2
        return fp

    if tile_seq is None:
        T_S = min(512, S)
    else:
        T_S = max(1, min(int(tile_seq), S))
    while T_S > 16 and footprint(T_S) > budget:
        T_S = max(16, T_S // 2)
    NT = _cdiv(S, T_S)
    S_pad = NT * T_S

    vmem_limit = int(max(min(int(1.3 * footprint(T_S)),
                             int(0.85 * vmem_phys)), 8 << 20))

    # ---- host-side data prep ----
    # Sequence + batch padding (matches F.pad(X, (0,0, 0,0, lookback, lookahead))).
    X_pad = jnp.pad(X.astype(jnp.float32),
                    ((lookback_window, lookahead_window), (0, Bp - B), (0, 0)))
    # Shifted view: X_win[j] == X_pad[j + K - 1]; tile i loads rows [i*T_S,(i+1)*T_S).
    X_win = X_pad[K - 1:]                                      # (S, Bp, I)
    X_win = jnp.pad(X_win, ((0, S_pad - S), (0, 0), (0, 0)))   # (S_pad, Bp, I)
    X_win = X_win.astype(compute_dtype)

    # Per-tap fused conv weights: (H, I, K) -> (K, I, Hp) per gate, concat gates.
    def _prep_w(W):
        Wt = jnp.transpose(W, (2, 1, 0)).astype(jnp.float32)   # (K, I, H)
        return jnp.pad(Wt, ((0, 0), (0, 0), (0, Hp - H)))
    W_fused = jnp.concatenate([_prep_w(Wz), _prep_w(Wf)],
                              axis=-1).astype(compute_dtype)   # (K, I, 2*Hp)
    b_fused = jnp.concatenate(
        [jnp.pad(bz.astype(jnp.float32), (0, Hp - H)),
         jnp.pad(bf.astype(jnp.float32), (0, Hp - H))]).reshape(1, 2 * Hp)

    if hidden is None:
        h0 = jnp.zeros((Bp, Hp), jnp.float32)
    else:
        h0 = jnp.pad(hidden.astype(jnp.float32), ((0, Bp - B), (0, Hp - H)))

    operands = [X_win, W_fused, b_fused, h0]
    in_specs = [
        pl.BlockSpec((T_S, Bt, I), lambda b, t: (t, b, 0)),      # X_win tile
        pl.BlockSpec((K, I, 2 * Hp), lambda b, t: (0, 0, 0)),    # weights
        pl.BlockSpec((1, 2 * Hp), lambda b, t: (0, 0)),          # bias
        pl.BlockSpec((Bt, Hp), lambda b, t: (b, 0)),             # h0
    ]
    scratch_shapes = [
        pltpu.VMEM((Bt, Hp), jnp.float32),                       # carried h
        pltpu.VMEM((T_S * Bt, 2 * Hp), jnp.float32),             # [a | b] coeffs
    ]
    if K > 1:
        C0 = X_pad[:K - 1].astype(compute_dtype)                 # (K-1, Bp, I)
        operands.append(C0)
        in_specs.append(pl.BlockSpec((K - 1, Bt, I), lambda b, t: (0, b, 0)))
        scratch_shapes.append(pltpu.VMEM((T_S + K - 1, Bt, I), compute_dtype))

    # recurrence unroll scaled with live-vreg pressure (a, b, h per step)
    vregs_per_step = max(1, (Bt // 8) * (Hp // 128) * 3)
    unroll = int(max(1, min(16, 40 // vregs_per_step, T_S)))

    kern = functools.partial(_qrnn_kernel, T_S, Bt, K, Hp, unroll)

    out = pl.pallas_call(
        kern,
        out_shape=jax.ShapeDtypeStruct((S_pad, Bp, Hp), out_dtype),
        grid_spec=pltpu.PrefetchScalarGridSpec(
            num_scalar_prefetch=0,
            grid=(NB, NT),
            in_specs=in_specs,
            out_specs=pl.BlockSpec((T_S, Bt, Hp), lambda b, t: (t, b, 0)),
            scratch_shapes=scratch_shapes),
        compiler_params=pltpu.CompilerParams(
            dimension_semantics=("parallel", "arbitrary"),
            vmem_limit_bytes=vmem_limit),
    )(*operands)

    H_out = out[:S, :B, :H]
    h_n = H_out[-1:]          # h at t = seq_len-1 (== C[-1:] in the module)
    return H_out, h_n


def _reference(X, Wz, bz, Wf, bf, lookback_window, lookahead_window, hidden=None):
    """Pure-JAX reference mirroring the PyTorch forward."""
    S, B, I = X.shape
    H = Wz.shape[0]
    K = lookback_window + 1 + lookahead_window
    X_pad = jnp.pad(X, ((lookback_window, lookahead_window), (0, 0), (0, 0)))

    def conv(W, b):
        out = b[None, None, :]
        for k in range(K):
            out = out + jnp.einsum('sbi,ih->sbh', X_pad[k:k + S], W[:, :, k].T)
        return out

    Z = conv(Wz, bz)
    F = conv(Wf, bf)
    Z = Z * jax.nn.sigmoid(1.702 * Z)
    F = jax.nn.sigmoid(F)

    h0 = jnp.zeros((B, H), jnp.float32) if hidden is None else hidden

    def step(h, zf):
        z, f = zf
        h_new = f * z + (1.0 - f) * h
        return h_new, h_new

    _, C = lax.scan(step, h0, (Z, F))
    return C, C[-1:]


def _make_params(key, H, I, K):
    k1, k2, k3, k4 = jax.random.split(key, 4)
    bound = 1.0 / (I * K) ** 0.5
    Wz = jax.random.uniform(k1, (H, I, K), jnp.float32, -bound, bound)
    bz = jax.random.uniform(k2, (H,), jnp.float32, -bound, bound)
    Wf = jax.random.uniform(k3, (H, I, K), jnp.float32, -bound, bound)
    bf = jax.random.uniform(k4, (H,), jnp.float32, -bound, bound)
    return Wz, bz, Wf, bf


if __name__ == "__main__":
    root = jax.random.PRNGKey(0)

    # --- config 1: module defaults (lookback=1, lookahead=0, hidden=None) ---
    S, B, I, Hd = 8, 2, 16, 32
    lb, la = 1, 0
    kx, kw = jax.random.split(root)
    X = jax.random.normal(kx, (S, B, I), jnp.float32)
    Wz, bz, Wf, bf = _make_params(kw, Hd, I, lb + 1 + la)

    H_out, h_n = qrnn_layer(X, Wz, bz, Wf, bf, hidden=None,
                            lookback_window=lb, lookahead_window=la,
                            tile_seq=4)            # 2 time tiles -> exercises carry
    jax.block_until_ready((H_out, h_n))
    H_ref, hn_ref = _reference(X, Wz, bz, Wf, bf, lb, la)
    assert H_out.shape == (S, B, Hd) and h_n.shape == (1, B, Hd)
    assert jnp.allclose(H_out, H_ref, atol=1e-4, rtol=1e-4), \
        float(jnp.max(jnp.abs(H_out - H_ref)))
    assert jnp.allclose(h_n, hn_ref, atol=1e-4, rtol=1e-4)

    # --- config 2: lookahead>0, hidden init, B>8 (2 batch tiles), T_S < K-1 ---
    S2, B2, I2, H2 = 5, 10, 8, 20
    lb2, la2 = 2, 1
    j1, j2, j3 = jax.random.split(jax.random.PRNGKey(1), 3)
    X2 = jax.random.normal(j1, (S2, B2, I2), jnp.float32)
    Wz2, bz2, Wf2, bf2 = _make_params(j2, H2, I2, lb2 + 1 + la2)
    hid2 = jax.random.normal(j3, (B2, H2), jnp.float32)

    H2_out, h2_n = qrnn_layer(X2, Wz2, bz2, Wf2, bf2, hidden=hid2,
                              lookback_window=lb2, lookahead_window=la2,
                              tile_seq=2)
    jax.block_until_ready((H2_out, h2_n))
    H2_ref, h2n_ref = _reference(X2, Wz2, bz2, Wf2, bf2, lb2, la2, hidden=hid2)
    assert jnp.allclose(H2_out, H2_ref, atol=1e-4, rtol=1e-4), \
        float(jnp.max(jnp.abs(H2_out - H2_ref)))
    assert jnp.allclose(h2_n, h2n_ref, atol=1e-4, rtol=1e-4)

    # --- config 3: bf16 matmul operands (f32 accumulate / f32 carry) ---
    S3, B3, I3, H3 = 16, 4, 16, 64
    m1, m2 = jax.random.split(jax.random.PRNGKey(2))
    X3 = jax.random.normal(m1, (S3, B3, I3), jnp.float32)
    Wz3, bz3, Wf3, bf3 = _make_params(m2, H3, I3, 2)
    H3_out, h3_n = qrnn_layer(X3, Wz3, bz3, Wf3, bf3,
                              lookback_window=1, lookahead_window=0,
                              compute_dtype=jnp.bfloat16)
    jax.block_until_ready((H3_out, h3_n))
    H3_ref, h3n_ref = _reference(X3, Wz3, bz3, Wf3, bf3, 1, 0)
    assert jnp.allclose(H3_out, H3_ref, atol=5e-2, rtol=5e-2), \
        float(jnp.max(jnp.abs(H3_out - H3_ref)))

    # --- config 4: K == 1 (no halo / no window scratch path) ---
    S4, B4, I4, H4 = 6, 3, 16, 16
    n1, n2 = jax.random.split(jax.random.PRNGKey(3))
    X4 = jax.random.normal(n1, (S4, B4, I4), jnp.float32)
    Wz4, bz4, Wf4, bf4 = _make_params(n2, H4, I4, 1)
    H4_out, h4_n = qrnn_layer(X4, Wz4, bz4, Wf4, bf4,
                              lookback_window=0, lookahead_window=0,
                              tile_seq=3)
    jax.block_until_ready((H4_out, h4_n))
    H4_ref, h4n_ref = _reference(X4, Wz4, bz4, Wf4, bf4, 0, 0)
    assert jnp.allclose(H4_out, H4_ref, atol=1e-4, rtol=1e-4), \
        float(jnp.max(jnp.abs(H4_out - H4_ref)))
    assert jnp.allclose(h4_n, h4n_ref, atol=1e-4, rtol=1e-4)

    print("KERNEL_OK")
</pallas_src>

<mosaic_0001>
module attributes {stable_mosaic.version = 11 : i64} {
  func.func @_qrnn_kernel(%arg0: i32, %arg1: i32, %arg2: memref<4x8x16xf32, #tpu.memory_space<vmem>>, %arg3: memref<2x16x256xf32, #tpu.memory_space<vmem>>, %arg4: memref<1x256xf32, #tpu.memory_space<vmem>>, %arg5: memref<8x128xf32, #tpu.memory_space<vmem>>, %arg6: memref<1x8x16xf32, #tpu.memory_space<vmem>>, %arg7: memref<4x8x128xf32, #tpu.memory_space<vmem>>, %arg8: memref<8x128xf32, #tpu.memory_space<vmem>>, %arg9: memref<32x256xf32, #tpu.memory_space<vmem>>, %arg10: memref<5x8x16xf32, #tpu.memory_space<vmem>>) attributes {dimension_semantics = [#tpu.dimension_semantics<parallel>, #tpu.dimension_semantics<arbitrary>], iteration_bounds = array<i64: 1, 2>, scalar_prefetch = 0 : i64, scratch_operands = 3 : i64, tpu.core_type = #tpu.core_type<tc>, window_params = [{transform_indices = @transform_0, window_bounds = array<i64: 4, 8, 16>}, {pipeline_mode = #tpu.pipeline_mode<synchronous>, transform_indices = @transform_1, window_bounds = array<i64: 2, 16, 256>}, {pipeline_mode = #tpu.pipeline_mode<synchronous>, transform_indices = @transform_2, window_bounds = array<i64: 1, 256>}, {transform_indices = @transform_3, window_bounds = array<i64: 8, 128>}, {transform_indices = @transform_4, window_bounds = array<i64: 1, 8, 16>}, {transform_indices = @transform_5, window_bounds = array<i64: 4, 8, 128>}]} {
    %c0_i32 = arith.constant 0 : i32
    %0 = arith.cmpi eq, %arg1, %c0_i32 : i32
    %1 = arith.extui %0 : i1 to i32
    %c0_i32_0 = arith.constant 0 : i32
    %2 = arith.cmpi ne, %1, %c0_i32_0 : i32
    scf.if %2 {
      %c0_55 = arith.constant 0 : index
      %c0_56 = arith.constant 0 : index
      %93 = vector.load %arg5[%c0_55, %c0_56] : memref<8x128xf32, #tpu.memory_space<vmem>>, vector<8x128xf32>
      %c0_57 = arith.constant 0 : index
      %c0_58 = arith.constant 0 : index
      %94 = vector.load %arg8[%c0_57, %c0_58] : memref<8x128xf32, #tpu.memory_space<vmem>>, vector<8x128xf32>
      tpu.vector_store %arg8[%c0_57, %c0_58], %93 {strides = array<i32>} : memref<8x128xf32, #tpu.memory_space<vmem>>, vector<8x128xf32>,
      %c0_59 = arith.constant 0 : index
      %c0_60 = arith.constant 0 : index
      %c0_61 = arith.constant 0 : index
      %95 = vector.load %arg6[%c0_59, %c0_60, %c0_61] : memref<1x8x16xf32, #tpu.memory_space<vmem>>, vector<1x8x16xf32>
      %c0_62 = arith.constant 0 : index
      %c0_63 = arith.constant 0 : index
      %c0_64 = arith.constant 0 : index
      %96 = vector.load %arg10[%c0_62, %c0_63, %c0_64] : memref<5x8x16xf32, #tpu.memory_space<vmem>>, vector<1x8x16xf32>
      tpu.vector_store %arg10[%c0_62, %c0_63, %c0_64], %95 {strides = array<i32>} : memref<5x8x16xf32, #tpu.memory_space<vmem>>, vector<1x8x16xf32>,
    } else {
    }
    %c0 = arith.constant 0 : index
    %c0_1 = arith.constant 0 : index
    %c0_2 = arith.constant 0 : index
    %3 = vector.load %arg2[%c0, %c0_1, %c0_2] : memref<4x8x16xf32, #tpu.memory_space<vmem>>, vector<4x8x16xf32>
    %c1 = arith.constant 1 : index
    %c0_3 = arith.constant 0 : index
    %c0_4 = arith.constant 0 : index
    %4 = vector.load %arg10[%c1, %c0_3, %c0_4] : memref<5x8x16xf32, #tpu.memory_space<vmem>>, vector<4x8x16xf32>
    tpu.vector_store %arg10[%c1, %c0_3, %c0_4], %3 {strides = array<i32>} : memref<5x8x16xf32, #tpu.memory_space<vmem>>, vector<4x8x16xf32>,
    %c0_5 = arith.constant 0 : index
    %c0_6 = arith.constant 0 : index
    %c0_7 = arith.constant 0 : index
    %5 = vector.load %arg10[%c0_5, %c0_6, %c0_7] : memref<5x8x16xf32, #tpu.memory_space<vmem>>, vector<4x8x16xf32>
    %6 = vector.shape_cast %5 : vector<4x8x16xf32> to vector<32x16xf32>
    %c0_8 = arith.constant 0 : index
    %c0_9 = arith.constant 0 : index
    %c0_10 = arith.constant 0 : index
    %7 = vector.load %arg3[%c0_8, %c0_9, %c0_10] : memref<2x16x256xf32, #tpu.memory_space<vmem>>, vector<1x16x256xf32>
    %8 = vector.shape_cast %7 : vector<1x16x256xf32> to vector<16x256xf32>
    %cst = arith.constant dense<0.000000e+00> : vector<32x256xf32>
    %9 = tpu.matmul %6, %8, %cst {dimension_numbers = #tpu.dot_dimension_numbers<[1], [0], [0], [1], [0, 0, 1, 1], [], []>} : vector<32x16xf32>, vector<16x256xf32>, vector<32x256xf32> -> vector<32x256xf32>
    %c1_11 = arith.constant 1 : index
    %c0_12 = arith.constant 0 : index
    %c0_13 = arith.constant 0 : index
    %10 = vector.load %arg10[%c1_11, %c0_12, %c0_13] : memref<5x8x16xf32, #tpu.memory_space<vmem>>, vector<4x8x16xf32>
    %11 = vector.shape_cast %10 : vector<4x8x16xf32> to vector<32x16xf32>
    %c1_14 = arith.constant 1 : index
    %c0_15 = arith.constant 0 : index
    %c0_16 = arith.constant 0 : index
    %12 = vector.load %arg3[%c1_14, %c0_15, %c0_16] : memref<2x16x256xf32, #tpu.memory_space<vmem>>, vector<1x16x256xf32>
    %13 = vector.shape_cast %12 : vector<1x16x256xf32> to vector<16x256xf32>
    %cst_17 = arith.constant dense<0.000000e+00> : vector<32x256xf32>
    %14 = tpu.matmul %11, %13, %cst_17 {dimension_numbers = #tpu.dot_dimension_numbers<[1], [0], [0], [1], [0, 0, 1, 1], [], []>} : vector<32x16xf32>, vector<16x256xf32>, vector<32x256xf32> -> vector<32x256xf32>
    %15 = arith.addf %9, %14 : vector<32x256xf32>
    %c0_18 = arith.constant 0 : index
    %c0_19 = arith.constant 0 : index
    %16 = vector.load %arg4[%c0_18, %c0_19] : memref<1x256xf32, #tpu.memory_space<vmem>>, vector<1x256xf32>
    %17 = vector.broadcast %16 : vector<1x256xf32> to vector<32x256xf32>
    %18 = arith.addf %15, %17 : vector<32x256xf32>
    %c4 = arith.constant 4 : index
    %c0_20 = arith.constant 0 : index
    %c0_21 = arith.constant 0 : index
    %19 = vector.load %arg10[%c4, %c0_20, %c0_21] : memref<5x8x16xf32, #tpu.memory_space<vmem>>, vector<1x8x16xf32>
    %c0_22 = arith.constant 0 : index
    %c0_23 = arith.constant 0 : index
    %c0_24 = arith.constant 0 : index
    %20 = vector.load %arg10[%c0_22, %c0_23, %c0_24] : memref<5x8x16xf32, #tpu.memory_space<vmem>>, vector<1x8x16xf32>
    tpu.vector_store %arg10[%c0_22, %c0_23, %c0_24], %19 {strides = array<i32>} : memref<5x8x16xf32, #tpu.memory_space<vmem>>, vector<1x8x16xf32>,
    %21 = vector.extract_strided_slice %18 {offsets = [0, 0], sizes = [32, 128], strides = [1, 1]} : vector<32x256xf32> to vector<32x128xf32>
    %22 = vector.extract_strided_slice %18 {offsets = [0, 128], sizes = [32, 128], strides = [1, 1]} : vector<32x256xf32> to vector<32x128xf32>
    %cst_25 = arith.constant 5.000000e-01 : f32
    %23 = vector.broadcast %cst_25 : f32 to vector<32x128xf32>
    %24 = arith.mulf %23, %22 : vector<32x128xf32>
    %25 = math.tanh %24 : vector<32x128xf32>
    %cst_26 = arith.constant 5.000000e-01 : f32
    %26 = vector.broadcast %cst_26 : f32 to vector<32x128xf32>
    %27 = arith.mulf %26, %25 : vector<32x128xf32>
    %cst_27 = arith.constant 5.000000e-01 : f32
    %28 = vector.broadcast %cst_27 : f32 to vector<32x128xf32>
    %29 = arith.addf %27, %28 : vector<32x128xf32>
    %cst_28 = arith.constant 8.510000e-01 : f32
    %30 = vector.broadcast %cst_28 : f32 to vector<32x128xf32>
    %31 = arith.mulf %30, %21 : vector<32x128xf32>
    %32 = math.tanh %31 : vector<32x128xf32>
    %cst_29 = arith.constant 5.000000e-01 : f32
    %33 = vector.broadcast %cst_29 : f32 to vector<32x128xf32>
    %34 = arith.mulf %33, %32 : vector<32x128xf32>
    %cst_30 = arith.constant 5.000000e-01 : f32
    %35 = vector.broadcast %cst_30 : f32 to vector<32x128xf32>
    %36 = arith.addf %34, %35 : vector<32x128xf32>
    %37 = arith.mulf %21, %36 : vector<32x128xf32>
    %38 = arith.mulf %29, %37 : vector<32x128xf32>
    %c0_31 = arith.constant 0 : index
    %c0_32 = arith.constant 0 : index
    %39 = vector.load %arg9[%c0_31, %c0_32] : memref<32x256xf32, #tpu.memory_space<vmem>>, vector<32x128xf32>
    tpu.vector_store %arg9[%c0_31, %c0_32], %38 {strides = array<i32>} : memref<32x256xf32, #tpu.memory_space<vmem>>, vector<32x128xf32>,
    %cst_33 = arith.constant 1.000000e+00 : f32
    %40 = vector.broadcast %cst_33 : f32 to vector<32x128xf32>
    %41 = arith.subf %40, %29 : vector<32x128xf32>
    %c0_34 = arith.constant 0 : index
    %c128 = arith.constant 128 : index
    %42 = vector.load %arg9[%c0_34, %c128] : memref<32x256xf32, #tpu.memory_space<vmem>>, vector<32x128xf32>
    tpu.vector_store %arg9[%c0_34, %c128], %41 {strides = array<i32>} : memref<32x256xf32, #tpu.memory_space<vmem>>, vector<32x128xf32>,
    %c0_35 = arith.constant 0 : index
    %c0_36 = arith.constant 0 : index
    %43 = vector.load %arg8[%c0_35, %c0_36] : memref<8x128xf32, #tpu.memory_space<vmem>>, vector<8x128xf32>
    %c0_i32_37 = arith.constant 0 : i32
    %c8_i32 = arith.constant 8 : i32
    %44 = arith.muli %c0_i32_37, %c8_i32 : i32
    %45 = tpu.assume_multiple %44, 8 : i32
    %46 = arith.index_cast %45 : i32 to index
    %c0_38 = arith.constant 0 : index
    %47 = vector.load %arg9[%46, %c0_38] : memref<32x256xf32, #tpu.memory_space<vmem>>, vector<8x256xf32>
    %48 = vector.extract_strided_slice %47 {offsets = [0, 0], sizes = [8, 128], strides = [1, 1]} : vector<8x256xf32> to vector<8x128xf32>
    %49 = vector.extract_strided_slice %47 {offsets = [0, 128], sizes = [8, 128], strides = [1, 1]} : vector<8x256xf32> to vector<8x128xf32>
    %50 = arith.mulf %49, %43 : vector<8x128xf32>
    %51 = arith.addf %48, %50 : vector<8x128xf32>
    %52 = arith.index_cast %c0_i32_37 : i32 to index
    %c0_39 = arith.constant 0 : index
    %c0_40 = arith.constant 0 : index
    %53 = vector.load %arg7[%52, %c0_39, %c0_40] : memref<4x8x128xf32, #tpu.memory_space<vmem>>, vector<1x8x128xf32>
    %54 = vector.shape_cast %53 : vector<1x8x128xf32> to vector<8x128xf32>
    %55 = vector.shape_cast %51 : vector<8x128xf32> to vector<1x8x128xf32>
    tpu.vector_store %arg7[%52, %c0_39, %c0_40], %55 {strides = array<i32>} : memref<4x8x128xf32, #tpu.memory_space<vmem>>, vector<1x8x128xf32>,
    %c1_i32 = arith.constant 1 : i32
    %c8_i32_41 = arith.constant 8 : i32
    %56 = arith.muli %c1_i32, %c8_i32_41 : i32
    %57 = tpu.assume_multiple %56, 8 : i32
    %58 = arith.index_cast %57 : i32 to index
    %c0_42 = arith.constant 0 : index
    %59 = vector.load %arg9[%58, %c0_42] : memref<32x256xf32, #tpu.memory_space<vmem>>, vector<8x256xf32>
    %60 = vector.extract_strided_slice %59 {offsets = [0, 0], sizes = [8, 128], strides = [1, 1]} : vector<8x256xf32> to vector<8x128xf32>
    %61 = vector.extract_strided_slice %59 {offsets = [0, 128], sizes = [8, 128], strides = [1, 1]} : vector<8x256xf32> to vector<8x128xf32>
    %62 = arith.mulf %61, %51 : vector<8x128xf32>
    %63 = arith.addf %60, %62 : vector<8x128xf32>
    %64 = arith.index_cast %c1_i32 : i32 to index
    %c0_43 = arith.constant 0 : index
    %c0_44 = arith.constant 0 : index
    %65 = vector.load %arg7[%64, %c0_43, %c0_44] : memref<4x8x128xf32, #tpu.memory_space<vmem>>, vector<1x8x128xf32>
    %66 = vector.shape_cast %65 : vector<1x8x128xf32> to vector<8x128xf32>
    %67 = vector.shape_cast %63 : vector<8x128xf32> to vector<1x8x128xf32>
    tpu.vector_store %arg7[%64, %c0_43, %c0_44], %67 {strides = array<i32>} : memref<4x8x128xf32, #tpu.memory_space<vmem>>, vector<1x8x128xf32>,
    %c2_i32 = arith.constant 2 : i32
    %c8_i32_45 = arith.constant 8 : i32
    %68 = arith.muli %c2_i32, %c8_i32_45 : i32
    %69 = tpu.assume_multiple %68, 8 : i32
    %70 = arith.index_cast %69 : i32 to index
    %c0_46 = arith.constant 0 : index
    %71 = vector.load %arg9[%70, %c0_46] : memref<32x256xf32, #tpu.memory_space<vmem>>, vector<8x256xf32>
    %72 = vector.extract_strided_slice %71 {offsets = [0, 0], sizes = [8, 128], strides = [1, 1]} : vector<8x256xf32> to vector<8x128xf32>
    %73 = vector.extract_strided_slice %71 {offsets = [0, 128], sizes = [8, 128], strides = [1, 1]} : vector<8x256xf32> to vector<8x128xf32>
    %74 = arith.mulf %73, %63 : vector<8x128xf32>
    %75 = arith.addf %72, %74 : vector<8x128xf32>
    %76 = arith.index_cast %c2_i32 : i32 to index
    %c0_47 = arith.constant 0 : index
    %c0_48 = arith.constant 0 : index
    %77 = vector.load %arg7[%76, %c0_47, %c0_48] : memref<4x8x128xf32, #tpu.memory_space<vmem>>, vector<1x8x128xf32>
    %78 = vector.shape_cast %77 : vector<1x8x128xf32> to vector<8x128xf32>
    %79 = vector.shape_cast %75 : vector<8x128xf32> to vector<1x8x128xf32>
    tpu.vector_store %arg7[%76, %c0_47, %c0_48], %79 {strides = array<i32>} : memref<4x8x128xf32, #tpu.memory_space<vmem>>, vector<1x8x128xf32>,
    %c3_i32 = arith.constant 3 : i32
    %c8_i32_49 = arith.constant 8 : i32
    %80 = arith.muli %c3_i32, %c8_i32_49 : i32
    %81 = tpu.assume_multiple %80, 8 : i32
    %82 = arith.index_cast %81 : i32 to index
    %c0_50 = arith.constant 0 : index
    %83 = vector.load %arg9[%82, %c0_50] : memref<32x256xf32, #tpu.memory_space<vmem>>, vector<8x256xf32>
    %84 = vector.extract_strided_slice %83 {offsets = [0, 0], sizes = [8, 128], strides = [1, 1]} : vector<8x256xf32> to vector<8x128xf32>
    %85 = vector.extract_strided_slice %83 {offsets = [0, 128], sizes = [8, 128], strides = [1, 1]} : vector<8x256xf32> to vector<8x128xf32>
    %86 = arith.mulf %85, %75 : vector<8x128xf32>
    %87 = arith.addf %84, %86 : vector<8x128xf32>
    %88 = arith.index_cast %c3_i32 : i32 to index
    %c0_51 = arith.constant 0 : index
    %c0_52 = arith.constant 0 : index
    %89 = vector.load %arg7[%88, %c0_51, %c0_52] : memref<4x8x128xf32, #tpu.memory_space<vmem>>, vector<1x8x128xf32>
    %90 = vector.shape_cast %89 : vector<1x8x128xf32> to vector<8x128xf32>
    %91 = vector.shape_cast %87 : vector<8x128xf32> to vector<1x8x128xf32>
    tpu.vector_store %arg7[%88, %c0_51, %c0_52], %91 {strides = array<i32>} : memref<4x8x128xf32, #tpu.memory_space<vmem>>, vector<1x8x128xf32>,
    %c4_i32 = arith.constant 4 : i32
    %c0_53 = arith.constant 0 : index
    %c0_54 = arith.constant 0 : index
    %92 = vector.load %arg8[%c0_53, %c0_54] : memref<8x128xf32, #tpu.memory_space<vmem>>, vector<8x128xf32>
    tpu.vector_store %arg8[%c0_53, %c0_54], %87 {strides = array<i32>} : memref<8x128xf32, #tpu.memory_space<vmem>>, vector<8x128xf32>,
    return
  }
  func.func @transform_0(%arg0: i32, %arg1: i32) -> (i32, i32, i32) {
    %c0_i32 = arith.constant 0 : i32
    %c0_i32_0 = arith.constant 0 : i32
    return %arg1, %arg0, %c0_i32 : i32, i32, i32
  }
  func.func @transform_1(%arg0: i32, %arg1: i32) -> (i32, i32, i32) {
    %c0_i32 = arith.constant 0 : i32
    %c0_i32_0 = arith.constant 0 : i32
    %c0_i32_1 = arith.constant 0 : i32
    %c0_i32_2 = arith.constant 0 : i32
    return %c0_i32, %c0_i32_0, %c0_i32_1 : i32, i32, i32
  }
  func.func @transform_2(%arg0: i32, %arg1: i32) -> (i32, i32) {
    %c0_i32 = arith.constant 0 : i32
    %c0_i32_0 = arith.constant 0 : i32
    %c0_i32_1 = arith.constant 0 : i32
    return %c0_i32, %c0_i32_0 : i32, i32
  }
  func.func @transform_3(%arg0: i32, %arg1: i32) -> (i32, i32) {
    %c0_i32 = arith.constant 0 : i32
    %c0_i32_0 = arith.constant 0 : i32
    return %arg0, %c0_i32 : i32, i32
  }
  func.func @transform_4(%arg0: i32, %arg1: i32) -> (i32, i32, i32) {
    %c0_i32 = arith.constant 0 : i32
    %c0_i32_0 = arith.constant 0 : i32
    %c0_i32_1 = arith.constant 0 : i32
    return %c0_i32, %arg0, %c0_i32_0 : i32, i32, i32
  }
  func.func @transform_5(%arg0: i32, %arg1: i32) -> (i32, i32, i32) {
    %c0_i32 = arith.constant 0 : i32
    %c0_i32_0 = arith.constant 0 : i32
    return %arg1, %arg0, %c0_i32 : i32, i32, i32
  }
}

</mosaic_0001>

<bundles_post_ra>
// kernel: tpu_custom_call.1
= control target key start
LH: loop header
LB: loop body
LE: loop exit
PB: predicated region body
PF: predicated region fallthrough
CT: control target
= control target key end

     0   :  { %10 = vsyncpa [#allocation6], 0  ;;  %s1461_s0 = inlined_call_operand.hbm [shape: f32[8,8,16], index: 0, kind: input, shape index: {}]   ;;  %s1462_s1 = inlined_call_operand.hbm [shape: f32[2,16,256], index: 1, kind: input, shape index: {}]   ;;  %s1463_s2 = inlined_call_operand.vmem [shape: f32[1,256], index: 2, kind: input, shape index: {}]   ;;  %s1464_s3 = inlined_call_operand.vmem [shape: f32[8,128], index: 3, kind: input, shape index: {}]   ;;  %s1465_s4 = inlined_call_operand.hbm [shape: f32[1,8,16], index: 4, kind: input, shape index: {}]   ;;  %s1466_s5 = inlined_call_operand.hbm [shape: f32[8,8,128], index: 5, kind: output, shape index: {}]  }
   0x1   :  { %12 = vsyncpa [#allocation6 + $0x1], 0 }
   0x2   :  { %13 = vsyncpa [#allocation9], 0 }
   0x3   :  { %14 = vsyncpa [#allocation7], 0 }
   0x4   :  { %16 = vsyncpa [#allocation7 + $0x1], 0  ;;  %s1173_s18 = smov 0   ;;  %s1175_s19 = smov 0  }
   0x5   :  { %s1177_s20 = smov 0   ;;  %s1179_s21 = smov 0  }
   0x6   :  { %s1181_s22 = smov 0   ;;  %s1183_s23 = smov 0  }
   0x7 LB: > { %s802_s24 = sadd.s32 4294967295, %s1130_s23   ;;  %s803_s25 = sadd.s32 4294967294, %s1130_s23   ;;  %s1130_s23 = sphi %s1183_s23, %s22_s23   ;;  %s1126_s22 = sphi %s1181_s22, %s1488_s22   ;;  %s1122_s21 = sphi %s1179_s21, %s1487_s21   ;;  %s1118_s20 = sphi %s1177_s20, %s1486_s20   ;;  %s1114_s19 = sphi %s1175_s19, %s1485_s19   ;;  %s1110_s18 = sphi %s1173_s18, %s1484_s18  }
   0x8   : > { %p56_p0 = scmp.ne.s32.totalorder %s1114_s19, %s1110_s18  ;;  %p1207_p1 = scmp.eq.s32.totalorder %s802_s24, 0 }
   0x9   : > { %p1211_p2 = scmp.eq.s32.totalorder %s802_s24, 1  ;;  %p182_p3 = scmp.eq.s32.totalorder %s803_s25, 1 }
   0xa   : > { %s1471_s26 = scalar_select %p1207_p1, 1, 0 }
   0xb   : > { %p1217_p4 = por %p1207_p1, %p56_p0  ;;  %p804_p5 = scmp.ge.s32.totalorder %s1130_s23, 1 }
   0xc   : > { %p1222_p6 = por %p182_p3, %p56_p0  ;;  %p189_p7 = scmp.lt.s32.totalorder %s1130_s23, 3 }
   0xd   : > { %s1473_s28 = scalar_select %p1217_p4, 1, 0 }
   0xe   : > { %s1474_s29 = scalar_select %p1222_p6, 1, 0 }
   0xf   : > { %p1227_p8 = pnand %p804_p5, %p189_p7  ;;  %s1132_s6 = smov [#allocation8]  }
  0x10   : > { %s201_s7 = sshll.u32 %s1132_s6, 4  ;;  %s1133_s9 = smov [#allocation10]   ;;  %s1231_s7 = int_to_ptr.vmem [resolvable:$true] %s201_s7 }
  0x11   : > { %p864_p9 = pneg %p1227_p8  ;;  %s227_s10 = sshll.u32 %s1133_s9, 4  ;;  %s1242_s10 = int_to_ptr.vmem [resolvable:$true] %s227_s10 }
  0x12   : > { %s958_s13 = scalar_lea.hbm %s1462_s1, 1024 }
  0x13   : > { %p1238_p11 = pnand %p864_p9, %p1207_p1  ;;  %p959_p12 = scmp.ne.s32.totalorder %s1462_s1, %s958_s13 }
  0x14   : > { %p965_p5 = scmp.lt.u32.totalorder %s958_s13, %s1462_s1 }
  0x15   : > { %p960_p13 = pneg %p1238_p11 }
  0x17   : > { %p961_p0 = pnand %p960_p13, %p959_p12 }
  0x19   : > { %p962_p3 = pneg %p961_p0 }
  0x1b   : > { %p967_p7 = pnand %p965_p5, %p962_p3 }
  0x1d   : > { %970 = shalt.err (!%p967_p7)
}
  0x1e   : > { %s971_s24 = scalar_lea.vmem %s1231_s7, 1024  ;;  %p979_p1 = scmp.lt.s32.totalorder %s1231_s7, %s1231_s7 }
  0x1f   : > { %p972_p9 = scmp.ne.s32.totalorder %s1231_s7, %s971_s24  ;;  %p980_p12 = scmp.lt.s32.totalorder %s971_s24, %s971_s24 }
  0x21   : > { %p974_p10 = pnand %p972_p9, %p960_p13  ;;  %p981_p0 = por %p980_p12, %p979_p1 }
  0x23   : > { %p975_p6 = pneg %p974_p10 }
  0x25   : > { %p982_p4 = pnand %p981_p0, %p975_p6 }
  0x27   : > { %985 = shalt.err (!%p982_p4)
}
  0x28   : > { %s1134_s25 = smov 256   ;;  %s1135_s6 = smov 16  }
  0x29   : > { %867 = dma.hbm_to_vmem [thread:$0]  (!%p1238_p11), %s1462_s1, 1024, %s1231_s7, [#allocation9], %s1134_s25, %s1134_s25, %s1135_s6  }
  0x2a   : > { %s986_s14 = scalar_lea.hbm %s1465_s4, 128 }
  0x2b   : > { %p987_p1 = scmp.ne.s32.totalorder %s1465_s4, %s986_s14  ;;  %p993_p10 = scmp.lt.u32.totalorder %s986_s14, %s1465_s4 }
  0x2d   : > { %p989_p4 = pnand %p987_p1, %p960_p13 }
  0x2f   : > { %p990_p6 = pneg %p989_p4 }
  0x31   : > { %p995_p3 = pnand %p993_p10, %p990_p6 }
  0x33   : > { %998 = shalt.err (!%p995_p3)
}
  0x34   : > { %s999_s7 = scalar_lea.vmem %s1242_s10, 128  ;;  %p1007_p12 = scmp.lt.s32.totalorder %s1242_s10, %s1242_s10 }
  0x35   : > { %p1000_p5 = scmp.ne.s32.totalorder %s1242_s10, %s999_s7  ;;  %p1008_p0 = scmp.lt.s32.totalorder %s999_s7, %s999_s7 }
  0x37   : > { %p1002_p7 = pnand %p1000_p5, %p960_p13  ;;  %p1009_p1 = por %p1008_p0, %p1007_p12 }
  0x39   : > { %p1003_p9 = pneg %p1002_p7 }
  0x3b   : > { %p1010_p4 = pnand %p1009_p1, %p1003_p9 }
  0x3d   : > { %1013 = shalt.err (!%p1010_p4)
}
  0x3e   : > { %870 = dma.hbm_to_vmem [thread:$0]  (!%p1238_p11), %s1465_s4, 128, %s1242_s10, [#allocation9]  }
  0x3f   : > { %s31_s9 = sadd.s32 1, %s1126_s22  ;;  %s43_s11 = sadd.s32 1, %s1118_s20 }
  0x40   : > { %p32_p13 = scmp.ge.s32.totalorder %s31_s9, 2  ;;  %p50_p6 = scmp.ne.s32.totalorder %s1118_s20, %s1114_s19 }
  0x41   : > { %p51_p10 = scmp.eq.s32.totalorder %s1130_s23, 0  ;;  %p881_p3 = scmp.lt.s32.totalorder %s1130_s23, 2 }
  0x42   : > { %s1490_s9 = smov (%p32_p13, %s31_s9), 0  ;;  %p1306_p7 = por %p1211_p2, %p50_p6 }
  0x43   : > { %p52_p5 = por %p51_p10, %p50_p6  ;;  %s38_s12 = ssub.s32 %s1126_s22, %s1490_s9 }
  0x44   : > { %s1477_s8 = scalar_select %p1306_p7, 1, 0 }
  0x45   : > { %s238_s13 = sand.u32 1, %s1118_s20   ;;  %p41_p9 = scmp.eq.s32.totalorder %s38_s12, 0 }
  0x46   : > { %s809_s10 = sshll.u32 %s238_s13, 5  ;;  %s834_s14 = sshll.u32 %s1126_s22, 9 }
  0x47   : > { %s1315_s15 = scalar_select %p41_p9, %s1118_s20, %s43_s11  }
  0x48   : > { %s1320_s24 = scalar_lea.hbm %s1461_s0, %s834_s14  ;;  %s242_s27 = scalar_lea.vmem [#allocation5], %s809_s10 }
  0x49   : > { %s250_s7 = sshll.u32 %s242_s27, 4  ;;  %p1324_p2 = pnand %p881_p3, %p52_p5  ;;  %s1328_s7 = int_to_ptr.vmem [resolvable:$true] %s250_s7 }
  0x4a   : > { %s1330_s6 = scalar_lea.sflag [#allocation6], %s238_s13  ;;  %s1014_s11 = scalar_lea.hbm %s1320_s24, 512 }
  0x4b   : > { %p1015_p11 = scmp.ne.s32.totalorder %s1320_s24, %s1014_s11  ;;  %p1016_p12 = pneg %p1324_p2 }
  0x4c   : > { %s1019_s14 = scalar_lea.hbm %s1461_s0, 1024  ;;  %p1020_p4 = scmp.lt.u32.totalorder %s1320_s24, %s1461_s0 }
  0x4d   : > { %p1017_p0 = pnand %p1016_p12, %p1015_p11  ;;  %p1021_p13 = scmp.lt.u32.totalorder %s1019_s14, %s1014_s11 }
  0x4e   : > { %p1023_p10 = scmp.lt.u32.totalorder %s1014_s11, %s1320_s24 }
  0x4f   : > { %p1018_p1 = pneg %p1017_p0  ;;  %p1022_p6 = por %p1021_p13, %p1020_p4 }
  0x51   : > { %p1024_p3 = por %p1023_p10, %p1022_p6 }
  0x53   : > { %p1025_p5 = pnand %p1024_p3, %p1018_p1 }
  0x55   : > { %1028 = shalt.err (!%p1025_p5)
}
  0x56   : > { %s1029_s13 = scalar_lea.vmem %s1328_s7, 512  ;;  %s1136_s27 = smov [#allocation5]  }
  0x57   : > { %p1030_p9 = scmp.ne.s32.totalorder %s1328_s7, %s1029_s13  ;;  %s1034_s12 = sshll.u32 %s1136_s27, 4  ;;  %s1035_s12 = int_to_ptr.vmem [resolvable:$false] %s1034_s12 }
  0x58   : > { %s1036_s10 = scalar_lea.vmem %s1035_s12, 1024  ;;  %p1037_p7 = scmp.lt.s32.totalorder %s1328_s7, %s1035_s12 }
  0x59   : > { %p1032_p11 = pnand %p1030_p9, %p1016_p12  ;;  %p1038_p4 = scmp.lt.s32.totalorder %s1036_s10, %s1029_s13 }
  0x5b   : > { %p1033_p0 = pneg %p1032_p11  ;;  %p1039_p13 = por %p1038_p4, %p1037_p7 }
  0x5d   : > { %p1040_p6 = pnand %p1039_p13, %p1033_p0 }
  0x5f   : > { %1043 = shalt.err (!%p1040_p6)
}
  0x60   : > { %s1137_s11 = smov 128   ;;  %s1138_s14 = smov 8  }
  0x61   : > { %874 = dma.hbm_to_vmem [thread:$0]  (!%p1324_p2), %s1320_s24, 512, %s1328_s7, %s1330_s6, %s1137_s11, %s1137_s11, %s1138_s14  }
  0x62   : > { %262 = sbr.rel (%p1227_p8) target bundleno = 397 (0x18d), region = 40  ;;  %s1361_s16 = sand.u32 (!%p1227_p8), 1, %s1114_s19  }
  0x63   : > { %s813_s17 = sshll.u32 (!%p1227_p8), %s1361_s16, 5  ;;  %s265_s13 = scalar_lea.sflag (!%p1227_p8), [#allocation6], %s1361_s16 }
  0x64   : > { %s1365_s27 = scalar_lea.vmem (!%p1227_p8), [#allocation5], %s813_s17  ;;  %p1479_p7 = scmp.ne.s32.totalorder (!%p1227_p8), %s1473_s28, 0 }
  0x69   : > { %1097 = dma.done.wait (%p1479_p7), %s265_s13, 512  }
  0x6a   : > { %1099 = vsyncadd (%p1479_p7), %s265_s13, 4294966784  ;;  %p1480_p2 = scmp.ne.s32.totalorder %s1471_s26, 0 }
  0x6c   : > { %1101 = dma.done.wait (%p1480_p2), [#allocation9], 1152  }
  0x6d   : > { %1103 = vsyncadd (%p1480_p2), [#allocation9], 4294966144  ;;  %s1375_s30 = scalar_lea.vmem [#allocation11], %s813_s17  ;;  %p817_p8 = scmp.ne.s32.totalorder %s1122_s21, 0 }
  0x6e   : > { %v317_v0 = vld [vmem:[%s1464_s3] sm:$0xff] (!%p817_p8)  ;;  %v319_v1 = vld [vmem:[#allocation10] sm:$0xff] (!%p817_p8)  ;;  %vm320_vm0 = vcmask (!%p817_p8), 130048  }
  0x6f   : > { %316 = sbr.rel (%p817_p8) target bundleno = 118 (0x76), region = 56  ;;  %318 = vst [vmem:[#allocation2] sm:$0xff] (!%p817_p8), %v317_v0  ;;  %321 = vst.msk [vmem:[#allocation4] sm:$0xff] (!%p817_p8), %vm320_vm0, %v319_v1 }
  0x76 PF: > { %v337_v2 = vld [vmem:[#allocation8 + $0x8] sm:$0xff]  ;;  %v339_v3 = vld [vmem:[#allocation8 + $0x18] sm:$0xff]  ;;  %v336_v7 = vld [vmem:[#allocation8] sm:$0xff]  ;;  %v1139_v9 = vmov 0.0   ;;  %vm327_vm1 = vcmask 130048   ;;  %v553_v24 = vlaneseq  ;;  %s835_s25 = sshll.u32 %s1122_s21, 9 }
  0x77   : > { %v346_v4 = vld [vmem:[#allocation8 + $0x28] sm:$0xff]  ;;  %v840_v5 = vpack.c.bf16 %v339_v3, %v337_v2  ;;  %v348_v6 = vld [vmem:[#allocation8 + $0x38] sm:$0xff]  ;;  %v338_v8 = vld [vmem:[#allocation8 + $0x10] sm:$0xff]  ;;  %526 = vmatprep.mubr.f32.mxu0 %v1139_v9  ;;  %425 = vmatprep.mubr.f32.mxu1 %v1139_v9  ;;  %s678_s6 = sshll.u32 %s1375_s30, 4  ;;  %s1409_s11 = scalar_lea.hbm %s1466_s5, %s835_s25  ;;  %s1411_s6 = int_to_ptr.vmem [resolvable:$true] %s678_s6 }
  0x78   : > { %v836_v10 = vpack.c.bf16 %v348_v6, %v346_v4  ;;  %v842_v11 = vpack.c.bf16 %v338_v8, %v336_v7  ;;  %v345_v12 = vld [vmem:[#allocation8 + $0x20] sm:$0xff]  ;;  %v347_v13 = vld [vmem:[#allocation8 + $0x30] sm:$0xff]  ;;  %v325_v14 = vld [vmem:[%s1365_s27 + $0x18] sm:$0xff]  ;;  %v554_v25 = vshrl.u32 %v553_v24, 7  ;;  %s664_s14 = scalar_lea.sflag [#allocation7], %s1361_s16  ;;  %s1044_s17 = scalar_lea.vmem %s1411_s6, 512 }
  0x79   : > { %841 = vmatprep.subr.bf16.mxu0 %v840_v5  ;;  %v838_v15 = vpack.c.bf16 %v347_v13, %v345_v12  ;;  %331 = vst.msk [vmem:[#allocation4 + $0x20] sm:$0xff] %vm327_vm1, %v325_v14  ;;  %v322_v16 = vld [vmem:[%s1365_s27] sm:$0xff]  ;;  %v323_v17 = vld [vmem:[%s1365_s27 + $0x8] sm:$0xff]  ;;  %v332_v18 = vld [vmem:[#allocation4] sm:$0xff]  ;;  %p1045_p12 = scmp.ne.s32.totalorder %s1411_s6, %s1044_s17  ;;  %p1481_p1 = scmp.ne.s32.totalorder %s1477_s8, 0 }
  0x7a   : > { %837 = vmatprep.subr.bf16.mxu1 %v836_v10  ;;  %843 = vmatpush1.bf16.msra.mxu0 %v842_v11  ;;  %328 = vst.msk [vmem:[#allocation4 + $0x8] sm:$0xff] %vm327_vm1, %v322_v16  ;;  %329 = vst.msk [vmem:[#allocation4 + $0x10] sm:$0xff] %vm327_vm1, %v323_v17  ;;  %v324_v19 = vld [vmem:[%s1365_s27 + $0x10] sm:$0xff]  ;;  %v555_v27 = vsub.s32 0, %v554_v25  ;;  %v559_v30 = vsub.s32 1, %v554_v25  ;;  %s1140_s21 = smov [#allocation11]  }
  0x7b   : > { %839 = vmatpush1.bf16.msra.mxu1 %v838_v15  ;;  %330 = vst.msk [vmem:[#allocation4 + $0x18] sm:$0xff] %vm327_vm1, %v324_v19  ;;  %v551_v28 = vld [vmem:[%s1463_s2] sm:$0x3]  ;;  %p1046_p10 = pnand %p1045_p12, %p1481_p1  ;;  %s1048_s13 = sshll.u32 %s1140_s21, 4  ;;  %s1049_s13 = int_to_ptr.vmem [resolvable:$false] %s1048_s13 }
  0x7c   : > { %v556_v31 = vrot.slane %v551_v28, %v555_v27  ;;  %v560_v33 = vrot.slane %v551_v28, %v559_v30  ;;  %v626_v16 = vld [vmem:[#allocation2] sm:$0xff]  ;;  %s1050_s27 = scalar_lea.vmem %s1049_s13, 1024  ;;  %p1051_p5 = scmp.lt.s32.totalorder %s1411_s6, %s1049_s13 }
  0x7d   : > { %822 = vmatmul.mubr.msk.f32.vlgmr.msra.gmra.mrb[0].mxu0 %vm327_vm1, %v332_v18  ;;  %p1047_p3 = pneg %p1046_p10  ;;  %p1052_p9 = scmp.lt.s32.totalorder %s1050_s27, %s1044_s17 }
  0x7e   : > { %532 = vmatprep.mubr.f32.mxu0 %v1139_v9 }
  0x7f   : > { %p1053_p11 = por %p1052_p9, %p1051_p5 }
  0x80   : > { %v572_v20 = vld [vmem:[#allocation4 + $0x20] sm:$0xff] }
  0x81   : > { %573 = vst.msk [vmem:[#allocation4] sm:$0xff] %vm327_vm1, %v572_v20  ;;  %v340_v21 = vld [vmem:[#allocation4 + $0x8] sm:$0xff]  ;;  %v341_v22 = vld [vmem:[#allocation4 + $0x10] sm:$0xff]  ;;  %p1054_p0 = pnand %p1053_p11, %p1047_p3 }
  0x82   : > { %818 = vmatmul.mubr.msk.f32.vlgmr.msra.gmra.mrb[0].mxu1 %vm327_vm1, %v340_v21  ;;  %823 = vmatmul.mubr.msk.f32.gmra.mrb[2].mxu0 %vm327_vm1, %v340_v21  ;;  %v342_v23 = vld [vmem:[#allocation4 + $0x18] sm:$0xff] }
  0x83   : > { %431 = vmatprep.mubr.f32.mxu1 %v1139_v9  ;;  %538 = vmatprep.mubr.f32.mxu0 %v1139_v9 }
  0x86   : > { %819 = vmatmul.mubr.msk.f32.gmra.mrb[2].mxu1 %vm327_vm1, %v341_v22  ;;  %824 = vmatmul.mubr.msk.f32.gmra.mrb[4].mxu0 %vm327_vm1, %v341_v22 }
  0x87   : > { %437 = vmatprep.mubr.f32.mxu1 %v1139_v9  ;;  %544 = vmatprep.mubr.f32.mxu0 %v1139_v9 }
  0x8a   : > { %820 = vmatmul.mubr.msk.f32.gmra.mrb[4].mxu1 %vm327_vm1, %v342_v23  ;;  %825 = vmatmul.mubr.msk.f32.gmra.mrb[6].mxu0 %vm327_vm1, %v342_v23 }
  0x8b   : > { %443 = vmatprep.mubr.f32.mxu1 %v1139_v9 }
  0x8e   : > { %821 = vmatmul.mubr.msk.f32.gmra.mrb[6].mxu1 %vm327_vm1, %v572_v20 }
 0x150   : > { %v528_v26 = vpop.f32.mrb[0].mxu0 }
 0x151   : > { %v530_v29 = vpop.f32.mrb[1].mxu0 }
 0x155   : > { %v427_v32 = vpop.f32.mrb[0].mxu1  ;;  %v534_v34 = vpop.f32.mrb[2].mxu0 }
 0x156   : > { %v529_v35 = vadd.f32 %v528_v26, %v427_v32  ;;  %v429_v36 = vpop.f32.mrb[1].mxu1  ;;  %v536_v37 = vpop.f32.mrb[3].mxu0 }
 0x157   : > { %v531_v38 = vadd.f32 %v530_v29, %v429_v36 }
 0x158   : > { %v563_v39 = vadd.f32 %v556_v31, %v529_v35 }
 0x159   : > { %v564_v40 = vadd.f32 %v560_v33, %v531_v38  ;;  %v433_v41 = vpop.f32.mrb[2].mxu1  ;;  %v540_v42 = vpop.f32.mrb[4].mxu0 }
 0x15a   : > { %v590_v43 = vmul.f32 0.851, %v563_v39  ;;  %v535_v44 = vadd.f32 %v534_v34, %v433_v41  ;;  %v435_v45 = vpop.f32.mrb[3].mxu1  ;;  %v542_v46 = vpop.f32.mrb[5].mxu0 }
 0x15b   : > { %v574_v47 = vmul.f32 0.5, %v564_v40  ;;  %v537_v48 = vadd.f32 %v536_v37, %v435_v45 }
 0x15c   : > { %942 = vtanh.f32 %v590_v43  ;;  %v565_v49 = vadd.f32 %v556_v31, %v535_v44 }
 0x15d   : > { %944 = vtanh.f32 %v574_v47  ;;  %v566_v50 = vadd.f32 %v560_v33, %v537_v48  ;;  %v439_v51 = vpop.f32.mrb[4].mxu1  ;;  %v546_v52 = vpop.f32.mrb[6].mxu0 }
 0x15e   : > { %v591_v53 = vmul.f32 0.851, %v565_v49  ;;  %v541_v54 = vadd.f32 %v540_v42, %v439_v51  ;;  %v441_v55 = vpop.f32.mrb[5].mxu1  ;;  %v548_v56 = vpop.f32.mrb[7].mxu0 }
 0x15f   : > { %v575_v57 = vmul.f32 0.5, %v566_v50  ;;  %v543_v58 = vadd.f32 %v542_v46, %v441_v55 }
 0x160   : > { %946 = vtanh.f32 %v591_v53  ;;  %v567_v59 = vadd.f32 %v556_v31, %v541_v54 }
 0x161   : > { %948 = vtanh.f32 %v575_v57  ;;  %v568_v60 = vadd.f32 %v560_v33, %v543_v58  ;;  %v445_v61 = vpop.f32.mrb[6].mxu1 }
 0x162   : > { %v592_v62 = vmul.f32 0.851, %v567_v59  ;;  %v547_v63 = vadd.f32 %v546_v52, %v445_v61  ;;  %v447_v0 = vpop.f32.mrb[7].mxu1 }
 0x163   : > { %v576_v1 = vmul.f32 0.5, %v568_v60  ;;  %v549_v2 = vadd.f32 %v548_v56, %v447_v0 }
 0x164   : > { %950 = vtanh.f32 %v592_v62  ;;  %v569_v3 = vadd.f32 %v556_v31, %v547_v63 }
 0x165   : > { %952 = vtanh.f32 %v576_v1  ;;  %v570_v4 = vadd.f32 %v560_v33, %v549_v2 }
 0x166   : > { %v943_v5 = vpop.eup %942  ;;  %v593_v6 = vmul.f32 0.851, %v569_v3 }
 0x167   : > { %v945_v7 = vpop.eup %944  ;;  %v598_v8 = vmul.f32 0.5, %v943_v5  ;;  %v577_v9 = vmul.f32 0.5, %v570_v4 }
 0x168   : > { %v582_v10 = vmul.f32 0.5, %v945_v7  ;;  %954 = vtanh.f32 %v593_v6 }
 0x169   : > { %v602_v11 = vadd.f32 0.5, %v598_v8  ;;  %956 = vtanh.f32 %v577_v9 }
 0x16a   : > { %v947_v12 = vpop.eup %946  ;;  %v586_v13 = vadd.f32 0.5, %v582_v10 }
 0x16b   : > { %v949_v14 = vpop.eup %948  ;;  %v606_v15 = vmul.f32 %v602_v11, %v563_v39  ;;  %v599_v17 = vmul.f32 0.5, %v947_v12 }
 0x16c   : > { %v618_v18 = vsub.f32 1.0, %v586_v13  ;;  %v583_v19 = vmul.f32 0.5, %v949_v14 }
 0x16d   : > { %v610_v20 = vmul.f32 %v606_v15, %v586_v13  ;;  %v603_v21 = vadd.f32 0.5, %v599_v17 }
 0x16e   : > { %v951_v22 = vpop.eup %950  ;;  %v632_v23 = vmul.f32 %v626_v16, %v618_v18  ;;  %v587_v24 = vadd.f32 0.5, %v583_v19 }
 0x16f   : > { %v953_v25 = vpop.eup %952  ;;  %v607_v26 = vmul.f32 %v603_v21, %v565_v49  ;;  %v600_v27 = vmul.f32 0.5, %v951_v22 }
 0x170   : > { %v633_v28 = vadd.f32 %v632_v23, %v610_v20  ;;  %v619_v29 = vsub.f32 1.0, %v587_v24  ;;  %v584_v30 = vmul.f32 0.5, %v953_v25 }
 0x171   : > { %v611_v31 = vmul.f32 %v607_v26, %v587_v24  ;;  %v604_v32 = vadd.f32 0.5, %v600_v27 }
 0x172   : > { %v955_v33 = vpop.eup %954  ;;  %634 = vst [vmem:[%s1375_s30] sm:$0xff] %v633_v28  ;;  %v640_v34 = vmul.f32 %v633_v28, %v619_v29  ;;  %v588_v35 = vadd.f32 0.5, %v584_v30 }
 0x173   : > { %v957_v36 = vpop.eup %956  ;;  %v608_v37 = vmul.f32 %v604_v32, %v567_v59  ;;  %v601_v38 = vmul.f32 0.5, %v955_v33 }
 0x174   : > { %v641_v39 = vadd.f32 %v640_v34, %v611_v31  ;;  %v620_v40 = vsub.f32 1.0, %v588_v35  ;;  %v585_v41 = vmul.f32 0.5, %v957_v36 }
 0x175   : > { %v612_v42 = vmul.f32 %v608_v37, %v588_v35  ;;  %v605_v43 = vadd.f32 0.5, %v601_v38 }
 0x176   : > { %826 = vst [vmem:[%s1375_s30 + $0x8] sm:$0xff] %v641_v39  ;;  %v649_v44 = vmul.f32 %v641_v39, %v620_v40  ;;  %v589_v45 = vadd.f32 0.5, %v585_v41 }
 0x177   : > { %v609_v46 = vmul.f32 %v605_v43, %v569_v3 }
 0x178   : > { %v650_v47 = vadd.f32 %v649_v44, %v612_v42  ;;  %v621_v48 = vsub.f32 1.0, %v589_v45 }
 0x179   : > { %v613_v49 = vmul.f32 %v609_v46, %v589_v45 }
 0x17a   : > { %827 = vst [vmem:[%s1375_s30 + $0x10] sm:$0xff] %v650_v47  ;;  %v658_v50 = vmul.f32 %v650_v47, %v621_v48 }
 0x17c   : > { %v659_v51 = vadd.f32 %v658_v50, %v613_v49 }
 0x17e   : > { %828 = vst [vmem:[%s1375_s30 + $0x18] sm:$0xff] %v659_v51  ;;  %662 = vst [vmem:[#allocation2] sm:$0xff] %v659_v51 }
 0x17f   : > { %1057 = shalt.err (!%p1054_p0)
}
 0x180   : > { %s1058_s30 = scalar_lea.hbm %s1409_s11, 512  ;;  %s1062_s26 = scalar_lea.hbm %s1466_s5, 1024 }
 0x181   : > { %p1059_p4 = scmp.ne.s32.totalorder %s1409_s11, %s1058_s30  ;;  %p1063_p7 = scmp.lt.u32.totalorder %s1409_s11, %s1466_s5 }
 0x182   : > { %p1064_p2 = scmp.lt.u32.totalorder %s1062_s26, %s1058_s30  ;;  %p1066_p12 = scmp.lt.u32.totalorder %s1058_s30, %s1409_s11 }
 0x183   : > { %p1060_p13 = pnand %p1059_p4, %p1481_p1 }
 0x184   : > { %p1065_p8 = por %p1064_p2, %p1063_p7 }
 0x185   : > { %p1061_p6 = pneg %p1060_p13 }
 0x186   : > { %p1067_p10 = por %p1066_p12, %p1065_p8 }
 0x188   : > { %p1068_p3 = pnand %p1067_p10, %p1061_p6 }
 0x18a   : > { %1071 = shalt.err (!%p1068_p3)
}
 0x18b   : > { %s1141_s12 = smov 128   ;;  %s1142_s10 = smov 8  }
 0x18c   : > { %862 = dma.vmem_to_hbm [thread:$0]  (%p1481_p1), %s1411_s6, 512, %s1409_s11, %s664_s14, %s1141_s12, %s1141_s12, %s1142_s10  }
 0x18d PF: > { %s693_s17 = sand.u32 1, %s1110_s18   ;;  %p1482_p5 = scmp.ne.s32.totalorder %s1474_s29, 0 }
 0x18e   : > { %p1483_p9 = scmp.ge.s32.totalorder %s1130_s23, 2  ;;  %s694_s21 = scalar_lea.sflag [#allocation7], %s693_s17 }
 0x190   : > { %p876_p11 = pnand %p1483_p9, %p1482_p5 }
 0x192   : > { %1105 = dma.done.wait (!%p876_p11), %s694_s21, 512  }
 0x193   : > { %1107 = vsyncadd (!%p876_p11), %s694_s21, 4294966784  ;;  %s22_s23 = sadd.s32 1, %s1130_s23   ;;  %s1484_s18 = smov %s1114_s19 }
 0x194   : > { %p19_p0 = scmp.ge.s32.totalorder %s22_s23, 4   ;;  %s1485_s19 = smov %s1118_s20 }
 0x195   : > { %s1486_s20 = smov %s1315_s15  ;;  %s1487_s21 = smov %s1126_s22 }
 0x196   : > { %s1488_s22 = smov %s1490_s9  ;;  %21 = sbr.rel (!%p19_p0) target bundleno = 7 (0x7), region = 111 }
 0x19d   :  { %699 = vsyncpa [#allocation6], 1 }
 0x19e   :  { %701 = vsyncpa [#allocation6 + $0x1], 1 }
 0x19f   :  { %702 = vsyncpa [#allocation9], 1 }
 0x1a0   :  { %703 = vsyncpa [#allocation7], 1 }
 0x1a1   :  { %705 = vsyncpa [#allocation7 + $0x1], 1 }

</bundles_post_ra>
